<compile_context>
chip_gen: v7x
topology: tpu7x:2x2x1
jax: 0.10.0
libtpu: 0.0.40
codegen_flags: <defaults>
</compile_context>

<pallas_src>
import jax
import jax.numpy as jnp
from jax import lax
from jax.experimental import pallas as pl
from jax.experimental.pallas import tpu as pltpu


def _round_up(n, m):
    return ((n + m - 1) // m) * m


def _cdiv(a, b):
    return -(-a // b)


def _vmem_capacity_bytes():
    # 64 MiB per TensorCore on v7x, 128 MiB on v5e/v6e. Conservative fallback.
    try:
        cap = getattr(pltpu.get_tpu_info(), "vmem_capacity_bytes", None)
        if cap:
            return int(cap)
    except Exception:
        pass
    return 64 * 1024 * 1024


# ----------------------------------------------------------------------------
# Kernels
# ----------------------------------------------------------------------------
def _make_resident_kernel(n_layers, compute_dtype):
    """All weights resident in VMEM; inner stack indexed in place."""

    def kernel(x_ref, w1_ref, b1_ref, win_ref, bin_ref, we_ref, be_ref, out_ref):
        # fc1 + input ReLU: bf16 MXU inputs, f32 accumulation, bias/ReLU in f32.
        h = jnp.dot(x_ref[...].astype(compute_dtype), w1_ref[...],
                    preferred_element_type=jnp.float32)
        h = jnp.maximum(h + b1_ref[...], 0.0)

        def layer(l, h):
            y = jnp.dot(h.astype(compute_dtype), win_ref[l],
                        preferred_element_type=jnp.float32)
            return jnp.maximum(y + bin_ref[l], 0.0)  # Dropout == identity (eval)

        if n_layers > 0:
            if n_layers <= 4:
                # Small stacks: full static unroll (cross-layer overlap).
                for l in range(n_layers):
                    h = layer(l, h)
            else:
                # Deep stacks: fori_loop bounds live activation slabs to one layer.
                h = lax.fori_loop(0, n_layers, layer, h)

        emb = jnp.dot(h.astype(compute_dtype), we_ref[...],
                      preferred_element_type=jnp.float32)
        out_ref[...] = (emb + be_ref[...]).astype(out_ref.dtype)

    return kernel


def _make_streaming_kernel(n_layers, compute_dtype):
    """Inner HxH weight stack stays in HBM; layers are double-buffer streamed."""

    def kernel(x_ref, w1_ref, b1_ref, win_hbm, bin_ref, we_ref, be_ref, out_ref,
               wbuf, sem):
        h = jnp.dot(x_ref[...].astype(compute_dtype), w1_ref[...],
                    preferred_element_type=jnp.float32)
        h = jnp.maximum(h + b1_ref[...], 0.0)

        if n_layers > 0:
            # Prime slot 0 with layer 0's weights.
            pltpu.make_async_copy(win_hbm.at[0], wbuf.at[0], sem.at[0]).start()

            def layer(l, h):
                slot = l % 2
                nxt = 1 - slot
                # Wait for this layer's weights (shape of the wait matches the copy).
                pltpu.make_async_copy(win_hbm.at[0], wbuf.at[slot],
                                      sem.at[slot]).wait()

                @pl.when(l + 1 < n_layers)
                def _():
                    pltpu.make_async_copy(win_hbm.at[l + 1], wbuf.at[nxt],
                                          sem.at[nxt]).start()

                y = jnp.dot(h.astype(compute_dtype), wbuf[slot],
                            preferred_element_type=jnp.float32)
                return jnp.maximum(y + bin_ref[l], 0.0)

            h = lax.fori_loop(0, n_layers, layer, h)

        emb = jnp.dot(h.astype(compute_dtype), we_ref[...],
                      preferred_element_type=jnp.float32)
        out_ref[...] = (emb + be_ref[...]).astype(out_ref.dtype)

    return kernel


# ----------------------------------------------------------------------------
# Parameter preparation (runs once, off the per-call forward path)
# ----------------------------------------------------------------------------
def prepare_params(params, *, compute_dtype=jnp.bfloat16):
    """Pad weights to 128-lane multiples and cast to the MXU compute dtype."""
    w1, b1 = params["w1"], params["b1"]            # (K, H), (H,)
    w_in, b_in = params["w_in"], params["b_in"]    # (L, H, H), (L, H)
    we, be = params["we"], params["be"]            # (H, E), (E,)

    K, H = w1.shape
    E = we.shape[1]
    L = w_in.shape[0]
    K_pad, H_pad, E_pad = (_round_up(d, 128) for d in (K, H, E))
    L_eff = max(L, 1)  # Mosaic rejects zero-sized operands

    def pad2(a, r, c):
        return jnp.pad(a, ((0, r - a.shape[0]), (0, c - a.shape[1])))

    if L == 0:
        w_in_p = jnp.zeros((1, H_pad, H_pad), compute_dtype)
        b_in_p = jnp.zeros((1, 1, H_pad), jnp.float32)
    else:
        w_in_p = jnp.pad(
            w_in, ((0, 0), (0, H_pad - H), (0, H_pad - H))).astype(compute_dtype)
        b_in_p = jnp.pad(
            b_in, ((0, 0), (0, H_pad - H))).reshape(L, 1, H_pad).astype(jnp.float32)

    return {
        "compute_dtype": compute_dtype,
        "dims": (K, H, E, L, K_pad, H_pad, E_pad, L_eff),
        "w1_p": pad2(w1, K_pad, H_pad).astype(compute_dtype),
        "b1_p": jnp.pad(b1, (0, H_pad - H)).reshape(1, H_pad).astype(jnp.float32),
        "w_in_p": w_in_p,
        "b_in_p": b_in_p,
        "we_p": pad2(we, H_pad, E_pad).astype(compute_dtype),
        "be_p": jnp.pad(be, (0, E_pad - E)).reshape(1, E_pad).astype(jnp.float32),
    }


# ----------------------------------------------------------------------------
# Forward wrapper
# ----------------------------------------------------------------------------
def mlp_image_encoder(x, params, *, compute_dtype=jnp.bfloat16, stream_inner=None):
    """x: (B, input_size) float32. params: raw (init_params) or prepared
    (prepare_params) weights. Returns (B, embedding_dim) float32."""
    if "w1_p" not in params:
        params = prepare_params(params, compute_dtype=compute_dtype)
    compute_dtype = params["compute_dtype"]
    K, H, E, L, K_pad, H_pad, E_pad, L_eff = params["dims"]

    B = x.shape[0]
    assert x.shape[1] == K, "input feature size mismatch"
    itemsize = jnp.dtype(compute_dtype).itemsize
    vmem_cap = _vmem_capacity_bytes()

    # Stream the inner HxH stack when it would not comfortably fit resident.
    inner_bytes = L_eff * H_pad * H_pad * itemsize
    if stream_inner is None:
        stream_inner = (L > 0) and (inner_bytes > vmem_cap // 2)
    stream_inner = bool(stream_inner) and L > 0

    # --- batch tile selection ------------------------------------------------
    B8 = _round_up(B, 8)
    if B8 >= 16:
        # >=2 grid tiles so both TensorCores on dual-core chips (v7x) get work,
        # up to 512-wide tiles on large batches (HBM-roofline sweet spot).
        TB = min(512, _round_up(_cdiv(B8, 2), 8))
    else:
        TB = B8

    def vmem_budget(tb, streaming):
        w_bytes = (K_pad * H_pad + H_pad * E_pad) * itemsize         # w1, we (x1)
        if streaming:
            w_bytes += 2 * H_pad * H_pad * itemsize                   # 2 layer slabs
        else:
            w_bytes += L_eff * H_pad * H_pad * itemsize               # full stack (x1)
        bias_bytes = 8 * (H_pad + L_eff * H_pad + E_pad) * 4          # sublane-padded
        io_bytes = 2 * tb * K_pad * 4 + 2 * tb * E_pad * 4            # 2x-buffered x/out
        act_bytes = 3 * tb * H_pad * 4 + tb * max(K_pad, H_pad) * itemsize
        return w_bytes + bias_bytes + io_bytes + act_bytes + (4 << 20)

    # Shrink the batch tile if the per-tile footprint would overflow VMEM.
    while TB > 8 and vmem_budget(TB, stream_inner) > vmem_cap:
        TB = _round_up(TB // 2, 8)

    B_pad = _round_up(B8, TB)
    n_tiles = B_pad // TB
    vmem_limit = int(min(max(vmem_budget(TB, stream_inner), 32 << 20), vmem_cap))

    # x stays f32 (cast to bf16 per-tile in-kernel); pad only when needed.
    if B_pad == B and K_pad == K:
        x_p = x
    else:
        x_p = jnp.pad(x, ((0, B_pad - B), (0, K_pad - K)))

    if stream_inner:
        kernel = _make_streaming_kernel(L, compute_dtype)
        scratch = [pltpu.VMEM((2, H_pad, H_pad), compute_dtype),
                   pltpu.SemaphoreType.DMA((2,))]
    else:
        kernel = _make_resident_kernel(L, compute_dtype)
        scratch = []

    def build(single_buffer_weights):
        def wspec(shape, idx):
            if single_buffer_weights:
                # Grid-invariant operand: single VMEM copy, no pipeline duplication.
                return pl.BlockSpec(shape, idx, pipeline_mode=pl.Buffered(1))
            return pl.BlockSpec(shape, idx)

        if stream_inner:
            w_in_spec = pl.BlockSpec(memory_space=pl.ANY)   # raw HBM, manual DMA
        else:
            w_in_spec = wspec((L_eff, H_pad, H_pad), lambda i: (0, 0, 0))

        return pl.pallas_call(
            kernel,
            out_shape=jax.ShapeDtypeStruct((B_pad, E_pad), jnp.float32),
            grid_spec=pltpu.PrefetchScalarGridSpec(
                num_scalar_prefetch=0,
                grid=(n_tiles,),
                in_specs=[
                    pl.BlockSpec((TB, K_pad), lambda i: (i, 0)),      # x tile (2x buf)
                    wspec((K_pad, H_pad), lambda i: (0, 0)),          # w1
                    wspec((1, H_pad), lambda i: (0, 0)),              # b1
                    w_in_spec,                                        # inner W stack
                    wspec((L_eff, 1, H_pad), lambda i: (0, 0, 0)),    # inner biases
                    wspec((H_pad, E_pad), lambda i: (0, 0)),          # we
                    wspec((1, E_pad), lambda i: (0, 0)),              # be
                ],
                out_specs=pl.BlockSpec((TB, E_pad), lambda i: (i, 0)),
                scratch_shapes=scratch,
            ),
            compiler_params=pltpu.CompilerParams(
                dimension_semantics=("parallel",),
                vmem_limit_bytes=vmem_limit,
            ),
        )

    args = (x_p, params["w1_p"], params["b1_p"], params["w_in_p"],
            params["b_in_p"], params["we_p"], params["be_p"])
    try:
        out_p = build(True)(*args)
    except Exception:
        # pl.Buffered(1) is a newer pipelining knob; fall back to default
        # (double-buffered) BlockSpecs if the installed jax rejects it.
        out_p = build(False)(*args)

    return out_p[:B, :E]


# ----------------------------------------------------------------------------
# Init + pure-JAX reference
# ----------------------------------------------------------------------------
def init_params(key, input_size, hidden_dim, embedding_dim, n_internal_layers):
    """PyTorch-Linear-style init U(-1/sqrt(fan_in), 1/sqrt(fan_in)), weights (in, out)."""
    ks = jax.random.split(key, 3 + 2 * n_internal_layers)

    def linear(kw, kb, fan_in, fan_out):
        bound = 1.0 / jnp.sqrt(fan_in)
        w = jax.random.uniform(kw, (fan_in, fan_out), jnp.float32, -bound, bound)
        b = jax.random.uniform(kb, (fan_out,), jnp.float32, -bound, bound)
        return w, b

    w1, b1 = linear(ks[0], ks[1], input_size, hidden_dim)
    wins, bins_ = [], []
    for l in range(n_internal_layers):
        w, b = linear(ks[2 + 2 * l], ks[3 + 2 * l], hidden_dim, hidden_dim)
        wins.append(w)
        bins_.append(b)
    we, be = linear(ks[-1], jax.random.fold_in(ks[-1], 1), hidden_dim, embedding_dim)
    if n_internal_layers > 0:
        w_in = jnp.stack(wins, axis=0)
        b_in = jnp.stack(bins_, axis=0)
    else:
        w_in = jnp.zeros((0, hidden_dim, hidden_dim), jnp.float32)
        b_in = jnp.zeros((0, hidden_dim), jnp.float32)
    return {"w1": w1, "b1": b1, "w_in": w_in, "b_in": b_in, "we": we, "be": be}


def reference_forward(x, params, compute_dtype=jnp.bfloat16):
    """Pure-JAX reference using the same bf16-in / f32-accumulate recipe."""
    c = lambda a: a.astype(compute_dtype)
    h = jnp.maximum(
        jnp.dot(c(x), c(params["w1"]), preferred_element_type=jnp.float32)
        + params["b1"], 0.0)
    for l in range(params["w_in"].shape[0]):
        h = jnp.maximum(
            jnp.dot(c(h), c(params["w_in"][l]), preferred_element_type=jnp.float32)
            + params["b_in"][l], 0.0)
    return (jnp.dot(c(h), c(params["we"]), preferred_element_type=jnp.float32)
            + params["be"])


if __name__ == "__main__":
    B, INPUT_SIZE, HIDDEN, EMB, N_LAYERS = 8, 32, 32, 16, 6

    key = jax.random.PRNGKey(0)
    kx, kp = jax.random.split(key)
    x = jax.random.normal(kx, (B, INPUT_SIZE), dtype=jnp.float32)
    params = init_params(kp, INPUT_SIZE, HIDDEN, EMB, N_LAYERS)
    prepared = prepare_params(params)          # one-time weight padding / casting
    ref = reference_forward(x, params)

    # 1) Resident-weight path (fori_loop inner stack, single-buffered weights).
    emb = jax.block_until_ready(mlp_image_encoder(x, prepared))
    assert emb.shape == (B, EMB)
    assert jnp.allclose(emb, ref, atol=1e-2, rtol=1e-2), "resident path mismatch"

    # 2) Forced layer-streaming path (manual double-buffered DMA of inner weights).
    emb_s = jax.block_until_ready(mlp_image_encoder(x, prepared, stream_inner=True))
    assert jnp.allclose(emb_s, ref, atol=1e-2, rtol=1e-2), "streaming path mismatch"

    # 3) Small-L statically-unrolled path.
    params2 = init_params(kp, INPUT_SIZE, HIDDEN, EMB, 2)
    emb2 = jax.block_until_ready(mlp_image_encoder(x, params2))
    ref2 = reference_forward(x, params2)
    assert jnp.allclose(emb2, ref2, atol=1e-2, rtol=1e-2), "unrolled path mismatch"

    print("KERNEL_OK")
</pallas_src>

<mosaic_0001>
module attributes {stable_mosaic.version = 11 : i64} {
  func.func @kernel(%arg0: i32, %arg1: memref<8x128xf32, #tpu.memory_space<vmem>>, %arg2: memref<128x128xbf16, #tpu.memory_space<vmem>>, %arg3: memref<1x128xf32, #tpu.memory_space<vmem>>, %arg4: memref<6x128x128xbf16, #tpu.memory_space<vmem>>, %arg5: memref<6x1x128xf32, #tpu.memory_space<vmem>>, %arg6: memref<128x128xbf16, #tpu.memory_space<vmem>>, %arg7: memref<1x128xf32, #tpu.memory_space<vmem>>, %arg8: memref<8x128xf32, #tpu.memory_space<vmem>>) attributes {dimension_semantics = [#tpu.dimension_semantics<parallel>], iteration_bounds = array<i64: 1>, scalar_prefetch = 0 : i64, scratch_operands = 0 : i64, tpu.core_type = #tpu.core_type<tc>, window_params = [{transform_indices = @transform_0, window_bounds = array<i64: 8, 128>}, {pipeline_mode = #tpu.pipeline_mode<synchronous>, transform_indices = @transform_1, window_bounds = array<i64: 128, 128>}, {pipeline_mode = #tpu.pipeline_mode<synchronous>, transform_indices = @transform_2, window_bounds = array<i64: 1, 128>}, {pipeline_mode = #tpu.pipeline_mode<synchronous>, transform_indices = @transform_3, window_bounds = array<i64: 6, 128, 128>}, {pipeline_mode = #tpu.pipeline_mode<synchronous>, transform_indices = @transform_4, window_bounds = array<i64: 6, 1, 128>}, {pipeline_mode = #tpu.pipeline_mode<synchronous>, transform_indices = @transform_5, window_bounds = array<i64: 128, 128>}, {pipeline_mode = #tpu.pipeline_mode<synchronous>, transform_indices = @transform_6, window_bounds = array<i64: 1, 128>}, {transform_indices = @transform_7, window_bounds = array<i64: 8, 128>}]} {
    %c0 = arith.constant 0 : index
    %c0_0 = arith.constant 0 : index
    %0 = vector.load %arg1[%c0, %c0_0] : memref<8x128xf32, #tpu.memory_space<vmem>>, vector<8x128xf32>
    %1 = arith.truncf %0 : vector<8x128xf32> to vector<8x128xbf16>
    %c0_1 = arith.constant 0 : index
    %c0_2 = arith.constant 0 : index
    %2 = vector.load %arg2[%c0_1, %c0_2] : memref<128x128xbf16, #tpu.memory_space<vmem>>, vector<128x128xbf16>
    %cst = arith.constant dense<0.000000e+00> : vector<8x128xf32>
    %3 = tpu.matmul %1, %2, %cst {dimension_numbers = #tpu.dot_dimension_numbers<[1], [0], [0], [1], [0, 0, 1, 1], [], []>} : vector<8x128xbf16>, vector<128x128xbf16>, vector<8x128xf32> -> vector<8x128xf32>
    %c0_3 = arith.constant 0 : index
    %c0_4 = arith.constant 0 : index
    %4 = vector.load %arg3[%c0_3, %c0_4] : memref<1x128xf32, #tpu.memory_space<vmem>>, vector<1x128xf32>
    %5 = vector.broadcast %4 : vector<1x128xf32> to vector<8x128xf32>
    %6 = arith.addf %3, %5 : vector<8x128xf32>
    %cst_5 = arith.constant 0.000000e+00 : f32
    %7 = vector.broadcast %cst_5 : f32 to vector<8x128xf32>
    %8 = arith.maximumf %6, %7 : vector<8x128xf32>
    %c0_i32 = arith.constant 0 : i32
    %c6_i32 = arith.constant 6 : i32
    %9 = arith.addi %c0_i32, %c6_i32 : i32
    %c1_i32 = arith.constant 1 : i32
    %10 = scf.for %arg9 = %c0_i32 to %9 step %c1_i32 iter_args(%arg10 = %8) -> (vector<8x128xf32>)  : i32 {
      %18 = arith.truncf %arg10 : vector<8x128xf32> to vector<8x128xbf16>
      %19 = arith.index_cast %arg9 : i32 to index
      %c0_14 = arith.constant 0 : index
      %c0_15 = arith.constant 0 : index
      %20 = vector.load %arg4[%19, %c0_14, %c0_15] : memref<6x128x128xbf16, #tpu.memory_space<vmem>>, vector<1x128x128xbf16>
      %21 = vector.shape_cast %20 : vector<1x128x128xbf16> to vector<128x128xbf16>
      %cst_16 = arith.constant dense<0.000000e+00> : vector<8x128xf32>
      %22 = tpu.matmul %18, %21, %cst_16 {dimension_numbers = #tpu.dot_dimension_numbers<[1], [0], [0], [1], [0, 0, 1, 1], [], []>} : vector<8x128xbf16>, vector<128x128xbf16>, vector<8x128xf32> -> vector<8x128xf32>
      %23 = arith.index_cast %arg9 : i32 to index
      %c0_17 = arith.constant 0 : index
      %c0_18 = arith.constant 0 : index
      %24 = vector.load %arg5[%23, %c0_17, %c0_18] : memref<6x1x128xf32, #tpu.memory_space<vmem>>, vector<1x1x128xf32>
      %25 = vector.shape_cast %24 : vector<1x1x128xf32> to vector<1x128xf32>
      %26 = vector.broadcast %25 : vector<1x128xf32> to vector<8x128xf32>
      %27 = arith.addf %22, %26 : vector<8x128xf32>
      %cst_19 = arith.constant 0.000000e+00 : f32
      %28 = vector.broadcast %cst_19 : f32 to vector<8x128xf32>
      %29 = arith.maximumf %27, %28 : vector<8x128xf32>
      scf.yield %29 : vector<8x128xf32>
    }
    %c6_i32_6 = arith.constant 6 : i32
    %11 = arith.truncf %10 : vector<8x128xf32> to vector<8x128xbf16>
    %c0_7 = arith.constant 0 : index
    %c0_8 = arith.constant 0 : index
    %12 = vector.load %arg6[%c0_7, %c0_8] : memref<128x128xbf16, #tpu.memory_space<vmem>>, vector<128x128xbf16>
    %cst_9 = arith.constant dense<0.000000e+00> : vector<8x128xf32>
    %13 = tpu.matmul %11, %12, %cst_9 {dimension_numbers = #tpu.dot_dimension_numbers<[1], [0], [0], [1], [0, 0, 1, 1], [], []>} : vector<8x128xbf16>, vector<128x128xbf16>, vector<8x128xf32> -> vector<8x128xf32>
    %c0_10 = arith.constant 0 : index
    %c0_11 = arith.constant 0 : index
    %14 = vector.load %arg7[%c0_10, %c0_11] : memref<1x128xf32, #tpu.memory_space<vmem>>, vector<1x128xf32>
    %15 = vector.broadcast %14 : vector<1x128xf32> to vector<8x128xf32>
    %16 = arith.addf %13, %15 : vector<8x128xf32>
    %c0_12 = arith.constant 0 : index
    %c0_13 = arith.constant 0 : index
    %17 = vector.load %arg8[%c0_12, %c0_13] : memref<8x128xf32, #tpu.memory_space<vmem>>, vector<8x128xf32>
    tpu.vector_store %arg8[%c0_12, %c0_13], %16 {strides = array<i32>} : memref<8x128xf32, #tpu.memory_space<vmem>>, vector<8x128xf32>,
    return
  }
  func.func @transform_0(%arg0: i32) -> (i32, i32) {
    %c0_i32 = arith.constant 0 : i32
    %c0_i32_0 = arith.constant 0 : i32
    return %arg0, %c0_i32 : i32, i32
  }
  func.func @transform_1(%arg0: i32) -> (i32, i32) {
    %c0_i32 = arith.constant 0 : i32
    %c0_i32_0 = arith.constant 0 : i32
    %c0_i32_1 = arith.constant 0 : i32
    return %c0_i32, %c0_i32_0 : i32, i32
  }
  func.func @transform_2(%arg0: i32) -> (i32, i32) {
    %c0_i32 = arith.constant 0 : i32
    %c0_i32_0 = arith.constant 0 : i32
    %c0_i32_1 = arith.constant 0 : i32
    return %c0_i32, %c0_i32_0 : i32, i32
  }
  func.func @transform_3(%arg0: i32) -> (i32, i32, i32) {
    %c0_i32 = arith.constant 0 : i32
    %c0_i32_0 = arith.constant 0 : i32
    %c0_i32_1 = arith.constant 0 : i32
    %c0_i32_2 = arith.constant 0 : i32
    return %c0_i32, %c0_i32_0, %c0_i32_1 : i32, i32, i32
  }
  func.func @transform_4(%arg0: i32) -> (i32, i32, i32) {
    %c0_i32 = arith.constant 0 : i32
    %c0_i32_0 = arith.constant 0 : i32
    %c0_i32_1 = arith.constant 0 : i32
    %c0_i32_2 = arith.constant 0 : i32
    return %c0_i32, %c0_i32_0, %c0_i32_1 : i32, i32, i32
  }
  func.func @transform_5(%arg0: i32) -> (i32, i32) {
    %c0_i32 = arith.constant 0 : i32
    %c0_i32_0 = arith.constant 0 : i32
    %c0_i32_1 = arith.constant 0 : i32
    return %c0_i32, %c0_i32_0 : i32, i32
  }
  func.func @transform_6(%arg0: i32) -> (i32, i32) {
    %c0_i32 = arith.constant 0 : i32
    %c0_i32_0 = arith.constant 0 : i32
    %c0_i32_1 = arith.constant 0 : i32
    return %c0_i32, %c0_i32_0 : i32, i32
  }
  func.func @transform_7(%arg0: i32) -> (i32, i32) {
    %c0_i32 = arith.constant 0 : i32
    %c0_i32_0 = arith.constant 0 : i32
    return %arg0, %c0_i32 : i32, i32
  }
}

module attributes {stable_mosaic.version = 11 : i64} {
  func.func @kernel(%arg0: i32, %arg1: memref<8x128xf32, #tpu.memory_space<vmem>>, %arg2: memref<128x128xbf16, #tpu.memory_space<vmem>>, %arg3: memref<1x128xf32, #tpu.memory_space<vmem>>, %arg4: memref<6x128x128xbf16, #tpu.memory_space<vmem>>, %arg5: memref<6x1x128xf32, #tpu.memory_space<vmem>>, %arg6: memref<128x128xbf16, #tpu.memory_space<vmem>>, %arg7: memref<1x128xf32, #tpu.memory_space<vmem>>, %arg8: memref<8x128xf32, #tpu.memory_space<vmem>>) attributes {dimension_semantics = [#tpu.dimension_semantics<parallel>], iteration_bounds = array<i64: 1>, scalar_prefetch = 0 : i64, scratch_operands = 0 : i64, tpu.core_type = #tpu.core_type<tc>, window_params = [{transform_indices = @transform_0, window_bounds = array<i64: 8, 128>}, {pipeline_mode = #tpu.pipeline_mode<synchronous>, transform_indices = @transform_1, window_bounds = array<i64: 128, 128>}, {pipeline_mode = #tpu.pipeline_mode<synchronous>, transform_indices = @transform_2, window_bounds = array<i64: 1, 128>}, {pipeline_mode = #tpu.pipeline_mode<synchronous>, transform_indices = @transform_3, window_bounds = array<i64: 6, 128, 128>}, {pipeline_mode = #tpu.pipeline_mode<synchronous>, transform_indices = @transform_4, window_bounds = array<i64: 6, 1, 128>}, {pipeline_mode = #tpu.pipeline_mode<synchronous>, transform_indices = @transform_5, window_bounds = array<i64: 128, 128>}, {pipeline_mode = #tpu.pipeline_mode<synchronous>, transform_indices = @transform_6, window_bounds = array<i64: 1, 128>}, {transform_indices = @transform_7, window_bounds = array<i64: 8, 128>}]} {
    %c0 = arith.constant 0 : index
    %c0_0 = arith.constant 0 : index
    %0 = vector.load %arg1[%c0, %c0_0] : memref<8x128xf32, #tpu.memory_space<vmem>>, vector<8x128xf32>
    %1 = arith.truncf %0 : vector<8x128xf32> to vector<8x128xbf16>
    %c0_1 = arith.constant 0 : index
    %c0_2 = arith.constant 0 : index
    %2 = vector.load %arg2[%c0_1, %c0_2] : memref<128x128xbf16, #tpu.memory_space<vmem>>, vector<128x128xbf16>
    %cst = arith.constant dense<0.000000e+00> : vector<8x128xf32>
    %3 = tpu.matmul %1, %2, %cst {dimension_numbers = #tpu.dot_dimension_numbers<[1], [0], [0], [1], [0, 0, 1, 1], [], []>} : vector<8x128xbf16>, vector<128x128xbf16>, vector<8x128xf32> -> vector<8x128xf32>
    %c0_3 = arith.constant 0 : index
    %c0_4 = arith.constant 0 : index
    %4 = vector.load %arg3[%c0_3, %c0_4] : memref<1x128xf32, #tpu.memory_space<vmem>>, vector<1x128xf32>
    %5 = vector.broadcast %4 : vector<1x128xf32> to vector<8x128xf32>
    %6 = arith.addf %3, %5 : vector<8x128xf32>
    %cst_5 = arith.constant 0.000000e+00 : f32
    %7 = vector.broadcast %cst_5 : f32 to vector<8x128xf32>
    %8 = arith.maximumf %6, %7 : vector<8x128xf32>
    %c0_i32 = arith.constant 0 : i32
    %c6_i32 = arith.constant 6 : i32
    %9 = arith.addi %c0_i32, %c6_i32 : i32
    %c1_i32 = arith.constant 1 : i32
    %10 = scf.for %arg9 = %c0_i32 to %9 step %c1_i32 iter_args(%arg10 = %8) -> (vector<8x128xf32>)  : i32 {
      %18 = arith.truncf %arg10 : vector<8x128xf32> to vector<8x128xbf16>
      %19 = arith.index_cast %arg9 : i32 to index
      %c0_14 = arith.constant 0 : index
      %c0_15 = arith.constant 0 : index
      %20 = vector.load %arg4[%19, %c0_14, %c0_15] : memref<6x128x128xbf16, #tpu.memory_space<vmem>>, vector<1x128x128xbf16>
      %21 = vector.shape_cast %20 : vector<1x128x128xbf16> to vector<128x128xbf16>
      %cst_16 = arith.constant dense<0.000000e+00> : vector<8x128xf32>
      %22 = tpu.matmul %18, %21, %cst_16 {dimension_numbers = #tpu.dot_dimension_numbers<[1], [0], [0], [1], [0, 0, 1, 1], [], []>} : vector<8x128xbf16>, vector<128x128xbf16>, vector<8x128xf32> -> vector<8x128xf32>
      %23 = arith.index_cast %arg9 : i32 to index
      %c0_17 = arith.constant 0 : index
      %c0_18 = arith.constant 0 : index
      %24 = vector.load %arg5[%23, %c0_17, %c0_18] : memref<6x1x128xf32, #tpu.memory_space<vmem>>, vector<1x1x128xf32>
      %25 = vector.shape_cast %24 : vector<1x1x128xf32> to vector<1x128xf32>
      %26 = vector.broadcast %25 : vector<1x128xf32> to vector<8x128xf32>
      %27 = arith.addf %22, %26 : vector<8x128xf32>
      %cst_19 = arith.constant 0.000000e+00 : f32
      %28 = vector.broadcast %cst_19 : f32 to vector<8x128xf32>
      %29 = arith.maximumf %27, %28 : vector<8x128xf32>
      scf.yield %29 : vector<8x128xf32>
    }
    %c6_i32_6 = arith.constant 6 : i32
    %11 = arith.truncf %10 : vector<8x128xf32> to vector<8x128xbf16>
    %c0_7 = arith.constant 0 : index
    %c0_8 = arith.constant 0 : index
    %12 = vector.load %arg6[%c0_7, %c0_8] : memref<128x128xbf16, #tpu.memory_space<vmem>>, vector<128x128xbf16>
    %cst_9 = arith.constant dense<0.000000e+00> : vector<8x128xf32>
    %13 = tpu.matmul %11, %12, %cst_9 {dimension_numbers = #tpu.dot_dimension_numbers<[1], [0], [0], [1], [0, 0, 1, 1], [], []>} : vector<8x128xbf16>, vector<128x128xbf16>, vector<8x128xf32> -> vector<8x128xf32>
    %c0_10 = arith.constant 0 : index
    %c0_11 = arith.constant 0 : index
    %14 = vector.load %arg7[%c0_10, %c0_11] : memref<1x128xf32, #tpu.memory_space<vmem>>, vector<1x128xf32>
    %15 = vector.broadcast %14 : vector<1x128xf32> to vector<8x128xf32>
    %16 = arith.addf %13, %15 : vector<8x128xf32>
    %c0_12 = arith.constant 0 : index
    %c0_13 = arith.constant 0 : index
    %17 = vector.load %arg8[%c0_12, %c0_13] : memref<8x128xf32, #tpu.memory_space<vmem>>, vector<8x128xf32>
    tpu.vector_store %arg8[%c0_12, %c0_13], %16 {strides = array<i32>} : memref<8x128xf32, #tpu.memory_space<vmem>>, vector<8x128xf32>,
    return
  }
  func.func @transform_0(%arg0: i32) -> (i32, i32) {
    %c0_i32 = arith.constant 0 : i32
    %c0_i32_0 = arith.constant 0 : i32
    return %arg0, %c0_i32 : i32, i32
  }
  func.func @transform_1(%arg0: i32) -> (i32, i32) {
    %c0_i32 = arith.constant 0 : i32
    %c0_i32_0 = arith.constant 0 : i32
    %c0_i32_1 = arith.constant 0 : i32
    return %c0_i32, %c0_i32_0 : i32, i32
  }
  func.func @transform_2(%arg0: i32) -> (i32, i32) {
    %c0_i32 = arith.constant 0 : i32
    %c0_i32_0 = arith.constant 0 : i32
    %c0_i32_1 = arith.constant 0 : i32
    return %c0_i32, %c0_i32_0 : i32, i32
  }
  func.func @transform_3(%arg0: i32) -> (i32, i32, i32) {
    %c0_i32 = arith.constant 0 : i32
    %c0_i32_0 = arith.constant 0 : i32
    %c0_i32_1 = arith.constant 0 : i32
    %c0_i32_2 = arith.constant 0 : i32
    return %c0_i32, %c0_i32_0, %c0_i32_1 : i32, i32, i32
  }
  func.func @transform_4(%arg0: i32) -> (i32, i32, i32) {
    %c0_i32 = arith.constant 0 : i32
    %c0_i32_0 = arith.constant 0 : i32
    %c0_i32_1 = arith.constant 0 : i32
    %c0_i32_2 = arith.constant 0 : i32
    return %c0_i32, %c0_i32_0, %c0_i32_1 : i32, i32, i32
  }
  func.func @transform_5(%arg0: i32) -> (i32, i32) {
    %c0_i32 = arith.constant 0 : i32
    %c0_i32_0 = arith.constant 0 : i32
    %c0_i32_1 = arith.constant 0 : i32
    return %c0_i32, %c0_i32_0 : i32, i32
  }
  func.func @transform_6(%arg0: i32) -> (i32, i32) {
    %c0_i32 = arith.constant 0 : i32
    %c0_i32_0 = arith.constant 0 : i32
    %c0_i32_1 = arith.constant 0 : i32
    return %c0_i32, %c0_i32_0 : i32, i32
  }
  func.func @transform_7(%arg0: i32) -> (i32, i32) {
    %c0_i32 = arith.constant 0 : i32
    %c0_i32_0 = arith.constant 0 : i32
    return %arg0, %c0_i32 : i32, i32
  }
}

</mosaic_0001>

<bundles_post_ra>
// kernel: tpu_custom_call.1
= control target key start
LH: loop header
LB: loop body
LE: loop exit
PB: predicated region body
PF: predicated region fallthrough
CT: control target
= control target key end

     0   :  { %12 = vsyncpa [#allocation3], 0  ;;  %s921_s0 = inlined_call_operand.hbm [shape: f32[8,128], index: 0, kind: input, shape index: {}]   ;;  %s922_s1 = inlined_call_operand.hbm [shape: bf16[128,128], index: 1, kind: input, shape index: {}]   ;;  %s923_s2 = inlined_call_operand.vmem [shape: f32[1,128], index: 2, kind: input, shape index: {}]   ;;  %s924_s3 = inlined_call_operand.hbm [shape: bf16[6,128,128], index: 3, kind: input, shape index: {}]   ;;  %s925_s4 = inlined_call_operand.vmem [shape: f32[6,1,128], index: 4, kind: input, shape index: {}]   ;;  %s926_s5 = inlined_call_operand.hbm [shape: bf16[128,128], index: 5, kind: input, shape index: {}]   ;;  %s927_s6 = inlined_call_operand.vmem [shape: f32[1,128], index: 6, kind: input, shape index: {}]   ;;  %s928_s7 = inlined_call_operand.hbm [shape: f32[8,128], index: 7, kind: output, shape index: {}]  }
   0x1   :  { %13 = vsyncpa [#allocation6], 0 }
   0x2   :  { %14 = vsyncpa [#allocation9], 0 }
   0x3   :  { %15 = vsyncpa [#allocation4], 0  ;;  %s762_s24 = smov [#allocation5]   ;;  %s628_s28 = scalar_lea.hbm %s922_s1, 1024 }
   0x4   :  { %s31_s25 = sshll.u32 %s762_s24, 4  ;;  %p629_p0 = scmp.ne.s32.totalorder %s922_s1, %s628_s28  ;;  %s32_s25 = int_to_ptr.vmem [resolvable:$true] %s31_s25 }
   0x5   :  { %p632_p1 = scmp.lt.u32.totalorder %s628_s28, %s922_s1 }
   0x7   :  { %p634_p2 = pnand %p632_p1, %p629_p0 }
   0x9   :  { %637 = shalt.err (!%p634_p2)
}
   0xa   :  { %s638_s10 = scalar_lea.vmem %s32_s25, 1024  ;;  %p643_p4 = scmp.lt.s32.totalorder %s32_s25, %s32_s25 }
   0xb   :  { %p639_p3 = scmp.ne.s32.totalorder %s32_s25, %s638_s10  ;;  %p644_p5 = scmp.lt.s32.totalorder %s638_s10, %s638_s10 }
   0xd   :  { %p645_p6 = por %p644_p5, %p643_p4 }
   0xf   :  { %p646_p7 = pnand %p645_p6, %p639_p3 }
  0x11   :  { %649 = shalt.err (!%p646_p7)
}
  0x12   :  { %s763_s11 = smov 64   ;;  %s764_s12 = smov 4  }
  0x13   :  { %37 = dma.hbm_to_vmem [thread:$0]  %s922_s1, 1024, %s32_s25, [#allocation6], %s763_s11, %s763_s11, %s764_s12  }
  0x14   :  { %s765_s15 = smov [#allocation2]   ;;  %s766_s17 = smov [#allocation7]  }
  0x15   :  { %s22_s16 = sshll.u32 %s765_s15, 4  ;;  %s45_s18 = sshll.u32 %s766_s17, 4  ;;  %s23_s16 = int_to_ptr.vmem [resolvable:$true] %s22_s16  ;;  %s46_s18 = int_to_ptr.vmem [resolvable:$true] %s45_s18 }
  0x16   :  { %s650_s21 = scalar_lea.hbm %s921_s0, 128 }
  0x17   :  { %p651_p8 = scmp.ne.s32.totalorder %s921_s0, %s650_s21  ;;  %p654_p9 = scmp.lt.u32.totalorder %s650_s21, %s921_s0 }
  0x19   :  { %p656_p10 = pnand %p654_p9, %p651_p8 }
  0x1b   :  { %659 = shalt.err (!%p656_p10)
}
  0x1c   :  { %s660_s1 = scalar_lea.vmem %s23_s16, 128  ;;  %p665_p12 = scmp.lt.s32.totalorder %s23_s16, %s23_s16 }
  0x1d   :  { %p661_p11 = scmp.ne.s32.totalorder %s23_s16, %s660_s1  ;;  %p666_p13 = scmp.lt.s32.totalorder %s660_s1, %s660_s1 }
  0x1f   :  { %p667_p0 = por %p666_p13, %p665_p12 }
  0x21   :  { %p668_p1 = pnand %p667_p0, %p661_p11 }
  0x23   :  { %671 = shalt.err (!%p668_p1)
}
  0x24   :  { %25 = dma.hbm_to_vmem [thread:$0]  %s921_s0, 128, %s23_s16, [#allocation3]  }
  0x25   :  { %s672_s30 = scalar_lea.hbm %s924_s3, 6144 }
  0x26   :  { %p673_p2 = scmp.ne.s32.totalorder %s924_s3, %s672_s30  ;;  %p676_p3 = scmp.lt.u32.totalorder %s672_s30, %s924_s3 }
  0x28   :  { %p678_p4 = pnand %p676_p3, %p673_p2 }
  0x2a   :  { %681 = shalt.err (!%p678_p4)
}
  0x2b   :  { %s682_s14 = scalar_lea.vmem %s46_s18, 6144  ;;  %p687_p6 = scmp.lt.s32.totalorder %s46_s18, %s46_s18 }
  0x2c   :  { %p683_p5 = scmp.ne.s32.totalorder %s46_s18, %s682_s14  ;;  %p688_p7 = scmp.lt.s32.totalorder %s682_s14, %s682_s14 }
  0x2e   :  { %p689_p8 = por %p688_p7, %p687_p6 }
  0x30   :  { %p690_p9 = pnand %p689_p8, %p683_p5 }
  0x32   :  { %693 = shalt.err (!%p690_p9)
}
  0x33   :  { %51 = dma.hbm_to_vmem [thread:$0]  %s924_s3, 6144, %s46_s18, [#allocation6], %s763_s11, %s763_s11, %s764_s12  }
  0x34   :  { %s767_s16 = smov [#allocation8]   ;;  %s694_s21 = scalar_lea.hbm %s926_s5, 1024 }
  0x35   :  { %s59_s17 = sshll.u32 %s767_s16, 4  ;;  %p695_p10 = scmp.ne.s32.totalorder %s926_s5, %s694_s21  ;;  %s60_s17 = int_to_ptr.vmem [resolvable:$true] %s59_s17 }
  0x36   :  { %p698_p11 = scmp.lt.u32.totalorder %s694_s21, %s926_s5 }
  0x38   :  { %p700_p12 = pnand %p698_p11, %p695_p10 }
  0x3a   :  { %703 = shalt.err (!%p700_p12)
}
  0x3b   :  { %s704_s1 = scalar_lea.vmem %s60_s17, 1024  ;;  %p709_p0 = scmp.lt.s32.totalorder %s60_s17, %s60_s17 }
  0x3c   :  { %p705_p13 = scmp.ne.s32.totalorder %s60_s17, %s704_s1  ;;  %p710_p1 = scmp.lt.s32.totalorder %s704_s1, %s704_s1 }
  0x3e   :  { %p711_p2 = por %p710_p1, %p709_p0 }
  0x40   :  { %p712_p3 = pnand %p711_p2, %p705_p13 }
  0x42   :  { %715 = shalt.err (!%p712_p3)
}
  0x43   :  { %65 = dma.hbm_to_vmem [thread:$0]  %s926_s5, 1024, %s60_s17, [#allocation9], %s763_s11, %s763_s11, %s764_s12  }
  0x44   :  { %746 = dma.done.wait [#allocation3], 128  }
  0x45   :  { %747 = vsyncadd [#allocation3], 4294967168 }
  0x46   :  { %748 = dma.done.wait [#allocation6], 7168  }
  0x47   :  { %749 = vsyncadd [#allocation6], 4294960128 }
  0x48   :  { %750 = dma.done.wait [#allocation9], 1024  }
  0x49   :  { %751 = vsyncadd [#allocation9], 4294966272  ;;  %v768_v0 = vmov 0.0   ;;  %vm769_vm0 = vmmov 0   ;;  %v604_v1 = vld [vmem:[#allocation5] sm:$0xff]   ;;  %v605_v2 = vld [vmem:[#allocation5 + $0x8] sm:$0xff]  }
  0x4a   :  { %517 = vmatprep.subr.bf16.mxu0 %v768_v0  ;;  %533 = vmatprep.mubr.msk.bf16.mxu0 %vm769_vm0, %v768_v0  ;;  %v606_v3 = vld [vmem:[#allocation5 + $0x10] sm:$0xff]   ;;  %v607_v4 = vld [vmem:[#allocation5 + $0x18] sm:$0xff]   ;;  %v608_v5 = vld [vmem:[#allocation5 + $0x20] sm:$0xff]   ;;  %s883_s12 = smov 0  }
  0x4b   :  { %518 = vmatpush3.bf16.msra.mxu0 %v604_v1  ;;  %v609_v6 = vld [vmem:[#allocation5 + $0x28] sm:$0xff]   ;;  %v610_v7 = vld [vmem:[#allocation5 + $0x30] sm:$0xff]   ;;  %v611_v8 = vld [vmem:[#allocation5 + $0x38] sm:$0xff]  }
  0x4c   :  { %519 = vmatprep.subr.bf16.mxu0 %v768_v0  ;;  %v81_v9 = vld [vmem:[#allocation2] sm:$0xff] }
  0x4d   :  { %v82_v10 = vpack.c.bf16 %v81_v9, %v81_v9  ;;  %v460_v11 = vld [vmem:[%s923_s2] ss:$0 sm:$0xff] }
  0x4f   :  { %520 = vmatpush3.bf16.msra.mxu0 %v605_v2 }
  0x50   :  { %521 = vmatprep.subr.bf16.mxu0 %v768_v0 }
  0x53   :  { %522 = vmatpush3.bf16.msra.mxu0 %v606_v3 }
  0x54   :  { %523 = vmatprep.subr.bf16.mxu0 %v768_v0 }
  0x57   :  { %524 = vmatpush3.bf16.msra.mxu0 %v607_v4 }
  0x58   :  { %525 = vmatprep.subr.bf16.mxu0 %v768_v0 }
  0x5b   :  { %526 = vmatpush3.bf16.msra.mxu0 %v608_v5 }
  0x5c   :  { %527 = vmatprep.subr.bf16.mxu0 %v768_v0 }
  0x5f   :  { %528 = vmatpush3.bf16.msra.mxu0 %v609_v6 }
  0x60   :  { %529 = vmatprep.subr.bf16.mxu0 %v768_v0 }
  0x63   :  { %530 = vmatpush3.bf16.msra.mxu0 %v610_v7 }
  0x64   :  { %531 = vmatprep.subr.bf16.mxu0 %v768_v0 }
  0x67   :  { %532 = vmatpush3.bf16.msra.mxu0 %v611_v8 }
  0x6a   :  { %534 = vmatmul.mubr.bf16.vlgmr.msra.gmra.mrb[0].mxu0 %v82_v10 }
 0x13d   :  { %v188_v12 = vpop.f32.mrb[0].mxu0 }
 0x13e   :  { %v189_v13 = vadd.f32 %v460_v11, %v188_v12  ;;  %v535_v14 = vpop.f32.mrb[1].mxu0 }
 0x13f   :  { %v191_v15 = vpop.f32.mrb[2].mxu0 }
 0x140   :  { %v194_v16 = vmax.f32 %v189_v13, 0.0   ;;  %v536_v17 = vpop.f32.mrb[3].mxu0 }
 0x142   :  { %v754_v18 = vmov %v194_v16  }
 0x143 LB: > { %v770_v19 = vmov 0.0   ;;  %vm771_vm1 = vmmov 0   ;;  %s489_s2 = sshll.u32 %s760_s12, 6  ;;  %v202_v28 = vpack.c.bf16 %v756_v18, %v756_v18  ;;  %s222_s29 = scalar_lea.vmem %s925_s4, %s760_s12  ;;  %s760_s12 = sphi %s883_s12, %s200_s12   ;;  %v756_v18 = vphi %v754_v18, %v755_v18  }
 0x144   : > { %537 = vmatprep.subr.bf16.mxu0 %v770_v19  ;;  %553 = vmatprep.mubr.msk.bf16.mxu0 %vm771_vm1, %v770_v19  ;;  %s205_s25 = scalar_lea.vmem [#allocation7], %s489_s2  ;;  %v471_v29 = vld [vmem:[%s222_s29] ss:$0 sm:$0xff]  ;;  %s200_s12 = sadd.s32 1, %s760_s12  }
 0x145   : > { %v612_v20 = vld [vmem:[%s205_s25] sm:$0xff]   ;;  %v613_v21 = vld [vmem:[%s205_s25 + $0x8] sm:$0xff]   ;;  %v614_v22 = vld [vmem:[%s205_s25 + $0x10] sm:$0xff]   ;;  %p197_p4 = scmp.ge.s32.totalorder %s200_s12, 6  }
 0x146   : > { %538 = vmatpush3.bf16.msra.mxu0 %v612_v20  ;;  %v615_v23 = vld [vmem:[%s205_s25 + $0x18] sm:$0xff]   ;;  %v616_v24 = vld [vmem:[%s205_s25 + $0x20] sm:$0xff]   ;;  %v617_v25 = vld [vmem:[%s205_s25 + $0x28] sm:$0xff]   ;;  %s772_s8 = smov (%p197_p4), [#allocation10]  }
 0x147   : > { %539 = vmatprep.subr.bf16.mxu0 %v770_v19  ;;  %v618_v26 = vld [vmem:[%s205_s25 + $0x30] sm:$0xff]   ;;  %v619_v27 = vld [vmem:[%s205_s25 + $0x38] sm:$0xff]   ;;  %v620_v36 = vld [vmem:[#allocation8] sm:$0xff] (%p197_p4)   ;;  %s438_s9 = sshll.u32 (%p197_p4), %s772_s8, 4  ;;  %s439_s9 = int_to_ptr.vmem [resolvable:$true] %s438_s9 }
 0x148   :  { %v621_v37 = vld [vmem:[#allocation8 + $0x8] sm:$0xff] (%p197_p4)   ;;  %v622_v38 = vld [vmem:[#allocation8 + $0x10] sm:$0xff] (%p197_p4)   ;;  %v623_v39 = vld [vmem:[#allocation8 + $0x18] sm:$0xff] (%p197_p4)   ;;  %s716_s10 = scalar_lea.vmem (%p197_p4), %s439_s9, 128  ;;  %p721_p6 = scmp.lt.s32.totalorder (%p197_p4), %s439_s9, %s439_s9 }
 0x149   :  { %v624_v40 = vld [vmem:[#allocation8 + $0x20] sm:$0xff] (%p197_p4)   ;;  %v625_v41 = vld [vmem:[#allocation8 + $0x28] sm:$0xff] (%p197_p4)   ;;  %v626_v42 = vld [vmem:[#allocation8 + $0x30] sm:$0xff] (%p197_p4)   ;;  %p717_p5 = scmp.ne.s32.totalorder (%p197_p4), %s439_s9, %s716_s10  ;;  %p722_p7 = scmp.lt.s32.totalorder (%p197_p4), %s716_s10, %s716_s10 }
 0x14a   : > { %540 = vmatpush3.bf16.msra.mxu0 %v613_v21  ;;  %v627_v43 = vld [vmem:[#allocation8 + $0x38] sm:$0xff] (%p197_p4)  }
 0x14b   : > { %541 = vmatprep.subr.bf16.mxu0 %v770_v19  ;;  %v480_v45 = vld [vmem:[%s927_s6] ss:$0 sm:$0xff] (%p197_p4)  ;;  %p723_p8 = por (%p197_p4), %p722_p7, %p721_p6 }
 0x14d   :  { %p724_p9 = pnand (%p197_p4), %p723_p8, %p717_p5 }
 0x14e   : > { %542 = vmatpush3.bf16.msra.mxu0 %v614_v22 }
 0x14f   : > { %543 = vmatprep.subr.bf16.mxu0 %v770_v19 }
 0x152   : > { %544 = vmatpush3.bf16.msra.mxu0 %v615_v23 }
 0x153   : > { %545 = vmatprep.subr.bf16.mxu0 %v770_v19 }
 0x156   : > { %546 = vmatpush3.bf16.msra.mxu0 %v616_v24 }
 0x157   : > { %547 = vmatprep.subr.bf16.mxu0 %v770_v19 }
 0x15a   : > { %548 = vmatpush3.bf16.msra.mxu0 %v617_v25 }
 0x15b   : > { %549 = vmatprep.subr.bf16.mxu0 %v770_v19 }
 0x15e   : > { %550 = vmatpush3.bf16.msra.mxu0 %v618_v26 }
 0x15f   : > { %551 = vmatprep.subr.bf16.mxu0 %v770_v19 }
 0x162   : > { %552 = vmatpush3.bf16.msra.mxu0 %v619_v27 }
 0x163   :  { %557 = vmatprep.subr.bf16.mxu0 (%p197_p4), %v768_v0 }
 0x165   : > { %554 = vmatmul.mubr.bf16.vlgmr.msra.gmra.mrb[0].mxu0 %v202_v28 }
 0x166   :  { %573 = vmatprep.mubr.msk.bf16.mxu0 (%p197_p4), %vm769_vm0, %v768_v0  ;;  %558 = vmatpush3.bf16.msra.mxu0 (%p197_p4), %v620_v36 }
 0x167   :  { %559 = vmatprep.subr.bf16.mxu0 (%p197_p4), %v768_v0 }
 0x16a   :  { %560 = vmatpush3.bf16.msra.mxu0 (%p197_p4), %v621_v37 }
 0x16b   :  { %561 = vmatprep.subr.bf16.mxu0 (%p197_p4), %v768_v0 }
 0x16e   :  { %562 = vmatpush3.bf16.msra.mxu0 (%p197_p4), %v622_v38 }
 0x16f   :  { %563 = vmatprep.subr.bf16.mxu0 (%p197_p4), %v768_v0 }
 0x172   :  { %564 = vmatpush3.bf16.msra.mxu0 (%p197_p4), %v623_v39 }
 0x173   :  { %565 = vmatprep.subr.bf16.mxu0 (%p197_p4), %v768_v0 }
 0x176   :  { %566 = vmatpush3.bf16.msra.mxu0 (%p197_p4), %v624_v40 }
 0x177   :  { %567 = vmatprep.subr.bf16.mxu0 (%p197_p4), %v768_v0 }
 0x17a   :  { %568 = vmatpush3.bf16.msra.mxu0 (%p197_p4), %v625_v41 }
 0x17b   :  { %569 = vmatprep.subr.bf16.mxu0 (%p197_p4), %v768_v0 }
 0x17e   :  { %570 = vmatpush3.bf16.msra.mxu0 (%p197_p4), %v626_v42 }
 0x17f   :  { %571 = vmatprep.subr.bf16.mxu0 (%p197_p4), %v768_v0 }
 0x182   :  { %572 = vmatpush3.bf16.msra.mxu0 (%p197_p4), %v627_v43 }
 0x237   :  { %199 = sbr.rel (!%p197_p4) target bundleno = 323 (0x143), region = 73 }
 0x238   : > { %v312_v30 = vpop.f32.mrb[0].mxu0 }
 0x239   : > { %v313_v31 = vadd.f32 %v471_v29, %v312_v30  ;;  %v555_v32 = vpop.f32.mrb[1].mxu0 }
 0x23a   : > { %v315_v33 = vpop.f32.mrb[2].mxu0 }
 0x23b   : > { %v318_v34 = vmax.f32 %v313_v31, 0.0   ;;  %v556_v35 = vpop.f32.mrb[3].mxu0 }
 0x23d   : > { %v755_v18 = vmov %v318_v34   ;;  %v319_v44 = vpack.c.bf16 (%p197_p4), %v318_v34, %v318_v34 }
 0x23f   :  { %574 = vmatmul.mubr.bf16.vlgmr.msra.gmra.mrb[0].mxu0 %v319_v44 }
 0x312   :  { %v425_v46 = vpop.f32.mrb[0].mxu0 }
 0x313   :  { %v426_v47 = vadd.f32 %v480_v45, %v425_v46  ;;  %v575_v48 = vpop.f32.mrb[1].mxu0 }
 0x314   :  { %v428_v49 = vpop.f32.mrb[2].mxu0 }
 0x315   :  { %431 = vst [vmem:[#allocation10] sm:$0xff] %v426_v47  ;;  %v576_v50 = vpop.f32.mrb[3].mxu0 }
 0x316   :  { %727 = shalt.err (!%p724_p9)
}
 0x317   :  { %s728_s6 = scalar_lea.hbm %s928_s7, 128 }
 0x318   :  { %p729_p10 = scmp.ne.s32.totalorder %s928_s7, %s728_s6  ;;  %p732_p11 = scmp.lt.u32.totalorder %s728_s6, %s928_s7 }
 0x31a   :  { %p734_p12 = pnand %p732_p11, %p729_p10 }
 0x31c   :  { %737 = shalt.err (!%p734_p12)
}
 0x31d   :  { %441 = dma.vmem_to_hbm [thread:$0]  %s439_s9, 128, %s928_s7, [#allocation4]  }
 0x31e   :  { %752 = dma.done.wait [#allocation4], 128  }
 0x31f   :  { %753 = vsyncadd [#allocation4], 4294967168 }
 0x320   :  { %445 = vsyncpa [#allocation3], 1 }
 0x321   :  { %446 = vsyncpa [#allocation6], 1 }
 0x322   :  { %447 = vsyncpa [#allocation9], 1 }
 0x323   :  { %448 = vsyncpa [#allocation4], 1 }

// kernel: tpu_custom_call.1
= control target key start
LH: loop header
LB: loop body
LE: loop exit
PB: predicated region body
PF: predicated region fallthrough
CT: control target
= control target key end

     0   :  { %12 = vsyncpa [#allocation3], 0  ;;  %s921_s0 = inlined_call_operand.hbm [shape: f32[8,128], index: 0, kind: input, shape index: {}]   ;;  %s922_s1 = inlined_call_operand.hbm [shape: bf16[128,128], index: 1, kind: input, shape index: {}]   ;;  %s923_s2 = inlined_call_operand.vmem [shape: f32[1,128], index: 2, kind: input, shape index: {}]   ;;  %s924_s3 = inlined_call_operand.hbm [shape: bf16[6,128,128], index: 3, kind: input, shape index: {}]   ;;  %s925_s4 = inlined_call_operand.vmem [shape: f32[6,1,128], index: 4, kind: input, shape index: {}]   ;;  %s926_s5 = inlined_call_operand.hbm [shape: bf16[128,128], index: 5, kind: input, shape index: {}]   ;;  %s927_s6 = inlined_call_operand.vmem [shape: f32[1,128], index: 6, kind: input, shape index: {}]   ;;  %s928_s7 = inlined_call_operand.hbm [shape: f32[8,128], index: 7, kind: output, shape index: {}]  }
   0x1   :  { %13 = vsyncpa [#allocation6], 0 }
   0x2   :  { %14 = vsyncpa [#allocation9], 0 }
   0x3   :  { %15 = vsyncpa [#allocation4], 0  ;;  %s762_s24 = smov [#allocation5]   ;;  %s628_s28 = scalar_lea.hbm %s922_s1, 1024 }
   0x4   :  { %s31_s25 = sshll.u32 %s762_s24, 4  ;;  %p629_p0 = scmp.ne.s32.totalorder %s922_s1, %s628_s28  ;;  %s32_s25 = int_to_ptr.vmem [resolvable:$true] %s31_s25 }
   0x5   :  { %p632_p1 = scmp.lt.u32.totalorder %s628_s28, %s922_s1 }
   0x7   :  { %p634_p2 = pnand %p632_p1, %p629_p0 }
   0x9   :  { %637 = shalt.err (!%p634_p2)
}
   0xa   :  { %s638_s10 = scalar_lea.vmem %s32_s25, 1024  ;;  %p643_p4 = scmp.lt.s32.totalorder %s32_s25, %s32_s25 }
   0xb   :  { %p639_p3 = scmp.ne.s32.totalorder %s32_s25, %s638_s10  ;;  %p644_p5 = scmp.lt.s32.totalorder %s638_s10, %s638_s10 }
   0xd   :  { %p645_p6 = por %p644_p5, %p643_p4 }
   0xf   :  { %p646_p7 = pnand %p645_p6, %p639_p3 }
  0x11   :  { %649 = shalt.err (!%p646_p7)
}
  0x12   :  { %s763_s11 = smov 64   ;;  %s764_s12 = smov 4  }
  0x13   :  { %37 = dma.hbm_to_vmem [thread:$0]  %s922_s1, 1024, %s32_s25, [#allocation6], %s763_s11, %s763_s11, %s764_s12  }
  0x14   :  { %s765_s15 = smov [#allocation2]   ;;  %s766_s17 = smov [#allocation7]  }
  0x15   :  { %s22_s16 = sshll.u32 %s765_s15, 4  ;;  %s45_s18 = sshll.u32 %s766_s17, 4  ;;  %s23_s16 = int_to_ptr.vmem [resolvable:$true] %s22_s16  ;;  %s46_s18 = int_to_ptr.vmem [resolvable:$true] %s45_s18 }
  0x16   :  { %s650_s21 = scalar_lea.hbm %s921_s0, 128 }
  0x17   :  { %p651_p8 = scmp.ne.s32.totalorder %s921_s0, %s650_s21  ;;  %p654_p9 = scmp.lt.u32.totalorder %s650_s21, %s921_s0 }
  0x19   :  { %p656_p10 = pnand %p654_p9, %p651_p8 }
  0x1b   :  { %659 = shalt.err (!%p656_p10)
}
  0x1c   :  { %s660_s1 = scalar_lea.vmem %s23_s16, 128  ;;  %p665_p12 = scmp.lt.s32.totalorder %s23_s16, %s23_s16 }
  0x1d   :  { %p661_p11 = scmp.ne.s32.totalorder %s23_s16, %s660_s1  ;;  %p666_p13 = scmp.lt.s32.totalorder %s660_s1, %s660_s1 }
  0x1f   :  { %p667_p0 = por %p666_p13, %p665_p12 }
  0x21   :  { %p668_p1 = pnand %p667_p0, %p661_p11 }
  0x23   :  { %671 = shalt.err (!%p668_p1)
}
  0x24   :  { %25 = dma.hbm_to_vmem [thread:$0]  %s921_s0, 128, %s23_s16, [#allocation3]  }
  0x25   :  { %s672_s30 = scalar_lea.hbm %s924_s3, 6144 }
  0x26   :  { %p673_p2 = scmp.ne.s32.totalorder %s924_s3, %s672_s30  ;;  %p676_p3 = scmp.lt.u32.totalorder %s672_s30, %s924_s3 }
  0x28   :  { %p678_p4 = pnand %p676_p3, %p673_p2 }
  0x2a   :  { %681 = shalt.err (!%p678_p4)
}
  0x2b   :  { %s682_s14 = scalar_lea.vmem %s46_s18, 6144  ;;  %p687_p6 = scmp.lt.s32.totalorder %s46_s18, %s46_s18 }
  0x2c   :  { %p683_p5 = scmp.ne.s32.totalorder %s46_s18, %s682_s14  ;;  %p688_p7 = scmp.lt.s32.totalorder %s682_s14, %s682_s14 }
  0x2e   :  { %p689_p8 = por %p688_p7, %p687_p6 }
  0x30   :  { %p690_p9 = pnand %p689_p8, %p683_p5 }
  0x32   :  { %693 = shalt.err (!%p690_p9)
}
  0x33   :  { %51 = dma.hbm_to_vmem [thread:$0]  %s924_s3, 6144, %s46_s18, [#allocation6], %s763_s11, %s763_s11, %s764_s12  }
  0x34   :  { %s767_s16 = smov [#allocation8]   ;;  %s694_s21 = scalar_lea.hbm %s926_s5, 1024 }
  0x35   :  { %s59_s17 = sshll.u32 %s767_s16, 4  ;;  %p695_p10 = scmp.ne.s32.totalorder %s926_s5, %s694_s21  ;;  %s60_s17 = int_to_ptr.vmem [resolvable:$true] %s59_s17 }
  0x36   :  { %p698_p11 = scmp.lt.u32.totalorder %s694_s21, %s926_s5 }
  0x38   :  { %p700_p12 = pnand %p698_p11, %p695_p10 }
  0x3a   :  { %703 = shalt.err (!%p700_p12)
}
  0x3b   :  { %s704_s1 = scalar_lea.vmem %s60_s17, 1024  ;;  %p709_p0 = scmp.lt.s32.totalorder %s60_s17, %s60_s17 }
  0x3c   :  { %p705_p13 = scmp.ne.s32.totalorder %s60_s17, %s704_s1  ;;  %p710_p1 = scmp.lt.s32.totalorder %s704_s1, %s704_s1 }
  0x3e   :  { %p711_p2 = por %p710_p1, %p709_p0 }
  0x40   :  { %p712_p3 = pnand %p711_p2, %p705_p13 }
  0x42   :  { %715 = shalt.err (!%p712_p3)
}
  0x43   :  { %65 = dma.hbm_to_vmem [thread:$0]  %s926_s5, 1024, %s60_s17, [#allocation9], %s763_s11, %s763_s11, %s764_s12  }
  0x44   :  { %746 = dma.done.wait [#allocation3], 128  }
  0x45   :  { %747 = vsyncadd [#allocation3], 4294967168 }
  0x46   :  { %748 = dma.done.wait [#allocation6], 7168  }
  0x47   :  { %749 = vsyncadd [#allocation6], 4294960128 }
  0x48   :  { %750 = dma.done.wait [#allocation9], 1024  }
  0x49   :  { %751 = vsyncadd [#allocation9], 4294966272  ;;  %v768_v0 = vmov 0.0   ;;  %vm769_vm0 = vmmov 0   ;;  %v604_v1 = vld [vmem:[#allocation5] sm:$0xff]   ;;  %v605_v2 = vld [vmem:[#allocation5 + $0x8] sm:$0xff]  }
  0x4a   :  { %517 = vmatprep.subr.bf16.mxu0 %v768_v0  ;;  %533 = vmatprep.mubr.msk.bf16.mxu0 %vm769_vm0, %v768_v0  ;;  %v606_v3 = vld [vmem:[#allocation5 + $0x10] sm:$0xff]   ;;  %v607_v4 = vld [vmem:[#allocation5 + $0x18] sm:$0xff]   ;;  %v608_v5 = vld [vmem:[#allocation5 + $0x20] sm:$0xff]   ;;  %s883_s12 = smov 0  }
  0x4b   :  { %518 = vmatpush3.bf16.msra.mxu0 %v604_v1  ;;  %v609_v6 = vld [vmem:[#allocation5 + $0x28] sm:$0xff]   ;;  %v610_v7 = vld [vmem:[#allocation5 + $0x30] sm:$0xff]   ;;  %v611_v8 = vld [vmem:[#allocation5 + $0x38] sm:$0xff]  }
  0x4c   :  { %519 = vmatprep.subr.bf16.mxu0 %v768_v0  ;;  %v81_v9 = vld [vmem:[#allocation2] sm:$0xff] }
  0x4d   :  { %v82_v10 = vpack.c.bf16 %v81_v9, %v81_v9  ;;  %v460_v11 = vld [vmem:[%s923_s2] ss:$0 sm:$0xff] }
  0x4f   :  { %520 = vmatpush3.bf16.msra.mxu0 %v605_v2 }
  0x50   :  { %521 = vmatprep.subr.bf16.mxu0 %v768_v0 }
  0x53   :  { %522 = vmatpush3.bf16.msra.mxu0 %v606_v3 }
  0x54   :  { %523 = vmatprep.subr.bf16.mxu0 %v768_v0 }
  0x57   :  { %524 = vmatpush3.bf16.msra.mxu0 %v607_v4 }
  0x58   :  { %525 = vmatprep.subr.bf16.mxu0 %v768_v0 }
  0x5b   :  { %526 = vmatpush3.bf16.msra.mxu0 %v608_v5 }
  0x5c   :  { %527 = vmatprep.subr.bf16.mxu0 %v768_v0 }
  0x5f   :  { %528 = vmatpush3.bf16.msra.mxu0 %v609_v6 }
  0x60   :  { %529 = vmatprep.subr.bf16.mxu0 %v768_v0 }
  0x63   :  { %530 = vmatpush3.bf16.msra.mxu0 %v610_v7 }
  0x64   :  { %531 = vmatprep.subr.bf16.mxu0 %v768_v0 }
  0x67   :  { %532 = vmatpush3.bf16.msra.mxu0 %v611_v8 }
  0x6a   :  { %534 = vmatmul.mubr.bf16.vlgmr.msra.gmra.mrb[0].mxu0 %v82_v10 }
 0x13d   :  { %v188_v12 = vpop.f32.mrb[0].mxu0 }
 0x13e   :  { %v189_v13 = vadd.f32 %v460_v11, %v188_v12  ;;  %v535_v14 = vpop.f32.mrb[1].mxu0 }
 0x13f   :  { %v191_v15 = vpop.f32.mrb[2].mxu0 }
 0x140   :  { %v194_v16 = vmax.f32 %v189_v13, 0.0   ;;  %v536_v17 = vpop.f32.mrb[3].mxu0 }
 0x142   :  { %v754_v18 = vmov %v194_v16  }
 0x143 LB: > { %v770_v19 = vmov 0.0   ;;  %vm771_vm1 = vmmov 0   ;;  %s489_s2 = sshll.u32 %s760_s12, 6  ;;  %v202_v28 = vpack.c.bf16 %v756_v18, %v756_v18  ;;  %s222_s29 = scalar_lea.vmem %s925_s4, %s760_s12  ;;  %s760_s12 = sphi %s883_s12, %s200_s12   ;;  %v756_v18 = vphi %v754_v18, %v755_v18  }
 0x144   : > { %537 = vmatprep.subr.bf16.mxu0 %v770_v19  ;;  %553 = vmatprep.mubr.msk.bf16.mxu0 %vm771_vm1, %v770_v19  ;;  %s205_s25 = scalar_lea.vmem [#allocation7], %s489_s2  ;;  %v471_v29 = vld [vmem:[%s222_s29] ss:$0 sm:$0xff]  ;;  %s200_s12 = sadd.s32 1, %s760_s12  }
 0x145   : > { %v612_v20 = vld [vmem:[%s205_s25] sm:$0xff]   ;;  %v613_v21 = vld [vmem:[%s205_s25 + $0x8] sm:$0xff]   ;;  %v614_v22 = vld [vmem:[%s205_s25 + $0x10] sm:$0xff]   ;;  %p197_p4 = scmp.ge.s32.totalorder %s200_s12, 6  }
 0x146   : > { %538 = vmatpush3.bf16.msra.mxu0 %v612_v20  ;;  %v615_v23 = vld [vmem:[%s205_s25 + $0x18] sm:$0xff]   ;;  %v616_v24 = vld [vmem:[%s205_s25 + $0x20] sm:$0xff]   ;;  %v617_v25 = vld [vmem:[%s205_s25 + $0x28] sm:$0xff]   ;;  %s772_s8 = smov (%p197_p4), [#allocation10]  }
 0x147   : > { %539 = vmatprep.subr.bf16.mxu0 %v770_v19  ;;  %v618_v26 = vld [vmem:[%s205_s25 + $0x30] sm:$0xff]   ;;  %v619_v27 = vld [vmem:[%s205_s25 + $0x38] sm:$0xff]   ;;  %v620_v36 = vld [vmem:[#allocation8] sm:$0xff] (%p197_p4)   ;;  %s438_s9 = sshll.u32 (%p197_p4), %s772_s8, 4  ;;  %s439_s9 = int_to_ptr.vmem [resolvable:$true] %s438_s9 }
 0x148   :  { %v621_v37 = vld [vmem:[#allocation8 + $0x8] sm:$0xff] (%p197_p4)   ;;  %v622_v38 = vld [vmem:[#allocation8 + $0x10] sm:$0xff] (%p197_p4)   ;;  %v623_v39 = vld [vmem:[#allocation8 + $0x18] sm:$0xff] (%p197_p4)   ;;  %s716_s10 = scalar_lea.vmem (%p197_p4), %s439_s9, 128  ;;  %p721_p6 = scmp.lt.s32.totalorder (%p197_p4), %s439_s9, %s439_s9 }
 0x149   :  { %v624_v40 = vld [vmem:[#allocation8 + $0x20] sm:$0xff] (%p197_p4)   ;;  %v625_v41 = vld [vmem:[#allocation8 + $0x28] sm:$0xff] (%p197_p4)   ;;  %v626_v42 = vld [vmem:[#allocation8 + $0x30] sm:$0xff] (%p197_p4)   ;;  %p717_p5 = scmp.ne.s32.totalorder (%p197_p4), %s439_s9, %s716_s10  ;;  %p722_p7 = scmp.lt.s32.totalorder (%p197_p4), %s716_s10, %s716_s10 }
 0x14a   : > { %540 = vmatpush3.bf16.msra.mxu0 %v613_v21  ;;  %v627_v43 = vld [vmem:[#allocation8 + $0x38] sm:$0xff] (%p197_p4)  }
 0x14b   : > { %541 = vmatprep.subr.bf16.mxu0 %v770_v19  ;;  %v480_v45 = vld [vmem:[%s927_s6] ss:$0 sm:$0xff] (%p197_p4)  ;;  %p723_p8 = por (%p197_p4), %p722_p7, %p721_p6 }
 0x14d   :  { %p724_p9 = pnand (%p197_p4), %p723_p8, %p717_p5 }
 0x14e   : > { %542 = vmatpush3.bf16.msra.mxu0 %v614_v22 }
 0x14f   : > { %543 = vmatprep.subr.bf16.mxu0 %v770_v19 }
 0x152   : > { %544 = vmatpush3.bf16.msra.mxu0 %v615_v23 }
 0x153   : > { %545 = vmatprep.subr.bf16.mxu0 %v770_v19 }
 0x156   : > { %546 = vmatpush3.bf16.msra.mxu0 %v616_v24 }
 0x157   : > { %547 = vmatprep.subr.bf16.mxu0 %v770_v19 }
 0x15a   : > { %548 = vmatpush3.bf16.msra.mxu0 %v617_v25 }
 0x15b   : > { %549 = vmatprep.subr.bf16.mxu0 %v770_v19 }
 0x15e   : > { %550 = vmatpush3.bf16.msra.mxu0 %v618_v26 }
 0x15f   : > { %551 = vmatprep.subr.bf16.mxu0 %v770_v19 }
 0x162   : > { %552 = vmatpush3.bf16.msra.mxu0 %v619_v27 }
 0x163   :  { %557 = vmatprep.subr.bf16.mxu0 (%p197_p4), %v768_v0 }
 0x165   : > { %554 = vmatmul.mubr.bf16.vlgmr.msra.gmra.mrb[0].mxu0 %v202_v28 }
 0x166   :  { %573 = vmatprep.mubr.msk.bf16.mxu0 (%p197_p4), %vm769_vm0, %v768_v0  ;;  %558 = vmatpush3.bf16.msra.mxu0 (%p197_p4), %v620_v36 }
 0x167   :  { %559 = vmatprep.subr.bf16.mxu0 (%p197_p4), %v768_v0 }
 0x16a   :  { %560 = vmatpush3.bf16.msra.mxu0 (%p197_p4), %v621_v37 }
 0x16b   :  { %561 = vmatprep.subr.bf16.mxu0 (%p197_p4), %v768_v0 }
 0x16e   :  { %562 = vmatpush3.bf16.msra.mxu0 (%p197_p4), %v622_v38 }
 0x16f   :  { %563 = vmatprep.subr.bf16.mxu0 (%p197_p4), %v768_v0 }
 0x172   :  { %564 = vmatpush3.bf16.msra.mxu0 (%p197_p4), %v623_v39 }
 0x173   :  { %565 = vmatprep.subr.bf16.mxu0 (%p197_p4), %v768_v0 }
 0x176   :  { %566 = vmatpush3.bf16.msra.mxu0 (%p197_p4), %v624_v40 }
 0x177   :  { %567 = vmatprep.subr.bf16.mxu0 (%p197_p4), %v768_v0 }
 0x17a   :  { %568 = vmatpush3.bf16.msra.mxu0 (%p197_p4), %v625_v41 }
 0x17b   :  { %569 = vmatprep.subr.bf16.mxu0 (%p197_p4), %v768_v0 }
 0x17e   :  { %570 = vmatpush3.bf16.msra.mxu0 (%p197_p4), %v626_v42 }
 0x17f   :  { %571 = vmatprep.subr.bf16.mxu0 (%p197_p4), %v768_v0 }
 0x182   :  { %572 = vmatpush3.bf16.msra.mxu0 (%p197_p4), %v627_v43 }
 0x237   :  { %199 = sbr.rel (!%p197_p4) target bundleno = 323 (0x143), region = 73 }
 0x238   : > { %v312_v30 = vpop.f32.mrb[0].mxu0 }
 0x239   : > { %v313_v31 = vadd.f32 %v471_v29, %v312_v30  ;;  %v555_v32 = vpop.f32.mrb[1].mxu0 }
 0x23a   : > { %v315_v33 = vpop.f32.mrb[2].mxu0 }
 0x23b   : > { %v318_v34 = vmax.f32 %v313_v31, 0.0   ;;  %v556_v35 = vpop.f32.mrb[3].mxu0 }
 0x23d   : > { %v755_v18 = vmov %v318_v34   ;;  %v319_v44 = vpack.c.bf16 (%p197_p4), %v318_v34, %v318_v34 }
 0x23f   :  { %574 = vmatmul.mubr.bf16.vlgmr.msra.gmra.mrb[0].mxu0 %v319_v44 }
 0x312   :  { %v425_v46 = vpop.f32.mrb[0].mxu0 }
 0x313   :  { %v426_v47 = vadd.f32 %v480_v45, %v425_v46  ;;  %v575_v48 = vpop.f32.mrb[1].mxu0 }
 0x314   :  { %v428_v49 = vpop.f32.mrb[2].mxu0 }
 0x315   :  { %431 = vst [vmem:[#allocation10] sm:$0xff] %v426_v47  ;;  %v576_v50 = vpop.f32.mrb[3].mxu0 }
 0x316   :  { %727 = shalt.err (!%p724_p9)
}
 0x317   :  { %s728_s6 = scalar_lea.hbm %s928_s7, 128 }
 0x318   :  { %p729_p10 = scmp.ne.s32.totalorder %s928_s7, %s728_s6  ;;  %p732_p11 = scmp.lt.u32.totalorder %s728_s6, %s928_s7 }
 0x31a   :  { %p734_p12 = pnand %p732_p11, %p729_p10 }
 0x31c   :  { %737 = shalt.err (!%p734_p12)
}
 0x31d   :  { %441 = dma.vmem_to_hbm [thread:$0]  %s439_s9, 128, %s928_s7, [#allocation4]  }
 0x31e   :  { %752 = dma.done.wait [#allocation4], 128  }
 0x31f   :  { %753 = vsyncadd [#allocation4], 4294967168 }
 0x320   :  { %445 = vsyncpa [#allocation3], 1 }
 0x321   :  { %446 = vsyncpa [#allocation6], 1 }
 0x322   :  { %447 = vsyncpa [#allocation9], 1 }
 0x323   :  { %448 = vsyncpa [#allocation4], 1 }

</bundles_post_ra>
